<compile_context>
chip_gen: v6e
topology: v6e:2x2x1
jax: 0.10.0
libtpu: 0.0.40
codegen_flags: <defaults>
</compile_context>

<pallas_src>
import numpy as np
import jax
import jax.numpy as jnp
from jax.experimental import pallas as pl
from jax.experimental.pallas import tpu as pltpu

BN_EPS = 1e-5


# ------------------------------ Pallas kernel ---------------------------------
def _conv_bn_kernel(x_ref, w_ref, b_ref, o_ref):
    """Fused 3x3 conv (stride 1, padding pre-applied) + BatchNorm (folded).

    x_ref : (1, H+2, (W+2)*Cin)    padded input image, channels-last, lane-flattened
    w_ref : (3, (W+2)*Cin, W*Cout) banded conv weight (BN scale pre-folded), one
                                   slab per kernel row dy
    b_ref : (1, W*Cout)            BN bias = beta - mean * scale, tiled over w
    o_ref : (1, H, W*Cout)         conv + BN output, channels-last, lane-flattened
    """
    H = o_ref.shape[1]
    xf = x_ref[0].astype(jnp.float32)                                 # (H+2, (W+2)*Cin)
    # One MXU matmul per kernel row; the banded weight handles all dx taps at once.
    acc = jnp.dot(xf[0:H, :], w_ref[0], preferred_element_type=jnp.float32)
    acc = acc + jnp.dot(xf[1:H + 1, :], w_ref[1], preferred_element_type=jnp.float32)
    acc = acc + jnp.dot(xf[2:H + 2, :], w_ref[2], preferred_element_type=jnp.float32)
    o_ref[0] = (acc + b_ref[...]).astype(o_ref.dtype)


# --------------------------- host-side weight prep -----------------------------
def _build_banded_weight(conv_w, scale, W):
    """conv_w: (Cout, Cin, 3, 3) PyTorch OIHW weight, scale: (Cout,) BN scale.
       Returns wband: (3, (W+2)*Cin, W*Cout) with
       wband[dy, (w+dx)*Cin + ci, w*Cout + co] = conv_w[co, ci, dy, dx] * scale[co]."""
    cw = np.asarray(conv_w, dtype=np.float32)
    sc = np.asarray(scale, dtype=np.float32)
    Cout, Cin, KH, KW = cw.shape
    Wp = W + 2
    wband = np.zeros((KH, Wp * Cin, W * Cout), np.float32)
    for dy in range(KH):
        for dx in range(KW):
            tap = cw[:, :, dy, dx].T * sc[None, :]                    # (Cin, Cout)
            for w in range(W):
                wp = w + dx
                wband[dy, wp * Cin:(wp + 1) * Cin, w * Cout:(w + 1) * Cout] = tap
    return jnp.asarray(wband)


def prepare_downsample_params(conv_w, bn_gamma, bn_beta, bn_mean, bn_var, W):
    scale = bn_gamma * jax.lax.rsqrt(bn_var + BN_EPS)                 # (Cout,)
    bias = bn_beta - bn_mean * scale                                  # (Cout,)
    return _build_banded_weight(conv_w, scale, W), bias


# --------------------------------- forward -------------------------------------
@jax.jit
def downsample_forward(x_nchw, wband, bias):
    B, Cin, H, W = x_nchw.shape
    Cout = bias.shape[0]
    assert H % 2 == 0 and W % 2 == 0, "PixelUnshuffle(2) needs even spatial dims"
    WPC = (W + 2) * Cin
    WC = W * Cout

    # Layout plumbing: NCHW -> padded channels-last, lane-flattened rows.
    x_cl = jnp.transpose(x_nchw, (0, 2, 3, 1))                        # (B, H, W, Cin)
    xp = jnp.pad(x_cl, ((0, 0), (1, 1), (1, 1), (0, 0)))              # (B, H+2, W+2, Cin)
    xp = xp.reshape(B, H + 2, WPC)

    bias_row = jnp.tile(bias, W).reshape(1, WC)                       # lane w*Cout+co -> bias[co]

    y = pl.pallas_call(
        _conv_bn_kernel,
        out_shape=jax.ShapeDtypeStruct((B, H, WC), x_nchw.dtype),
        grid=(B,),
        in_specs=[
            pl.BlockSpec((1, H + 2, WPC), lambda b: (b, 0, 0)),
            pl.BlockSpec((3, WPC, WC), lambda b: (0, 0, 0)),          # resident across grid
            pl.BlockSpec((1, WC), lambda b: (0, 0)),                  # resident across grid
        ],
        out_specs=pl.BlockSpec((1, H, WC), lambda b: (b, 0, 0)),
        compiler_params=pltpu.CompilerParams(
            dimension_semantics=("parallel",)),
    )(xp, wband, bias_row)                                            # (B, H, W*Cout)

    # PixelUnshuffle(2): pure layout permutation of the final (small) output.
    y = y.reshape(B, H // 2, 2, W // 2, 2, Cout)                      # (b, h2, i, w2, j, co)
    y = jnp.transpose(y, (0, 5, 2, 4, 1, 3))                          # (b, co, i, j, h2, w2)
    return y.reshape(B, Cout * 4, H // 2, W // 2)


# ---------------------------- pure-JAX reference --------------------------------
def reference_forward(x_nchw, conv_w, bn_gamma, bn_beta, bn_mean, bn_var):
    y = jax.lax.conv_general_dilated(
        x_nchw, conv_w, window_strides=(1, 1), padding=((1, 1), (1, 1)),
        dimension_numbers=("NCHW", "OIHW", "NCHW"),
        precision=jax.lax.Precision.HIGHEST)
    scale = bn_gamma * jax.lax.rsqrt(bn_var + BN_EPS)
    bias = bn_beta - bn_mean * scale
    y = y * scale[None, :, None, None] + bias[None, :, None, None]
    B, C, Hh, Ww = y.shape
    y = y.reshape(B, C, Hh // 2, 2, Ww // 2, 2)
    y = jnp.transpose(y, (0, 1, 3, 5, 2, 4))
    return y.reshape(B, C * 4, Hh // 2, Ww // 2)


# ------------------------------------ main --------------------------------------
if __name__ == "__main__":
    N_FEAT = 32                      # n_feat; conv output channels = n_feat // 4 = 8
    B, H, W = 2, 16, 16
    COUT = N_FEAT // 4

    key = jax.random.PRNGKey(0)
    kx, kw, kg, kb, km, kv = jax.random.split(key, 6)
    x = jax.random.normal(kx, (B, N_FEAT, H, W), jnp.float32)
    conv_w = jax.random.normal(kw, (COUT, N_FEAT, 3, 3), jnp.float32) * 0.05
    bn_gamma = 1.0 + 0.1 * jax.random.normal(kg, (COUT,), jnp.float32)
    bn_beta = 0.1 * jax.random.normal(kb, (COUT,), jnp.float32)
    bn_mean = 0.1 * jax.random.normal(km, (COUT,), jnp.float32)
    bn_var = jax.random.uniform(kv, (COUT,), jnp.float32, minval=0.5, maxval=1.5)

    wband, bias = prepare_downsample_params(
        conv_w, bn_gamma, bn_beta, bn_mean, bn_var, W)

    out = downsample_forward(x, wband, bias)
    out = jax.block_until_ready(out)

    ref = reference_forward(x, conv_w, bn_gamma, bn_beta, bn_mean, bn_var)
    ref = jax.block_until_ready(ref)
    np.testing.assert_allclose(np.asarray(out), np.asarray(ref), rtol=2e-4, atol=2e-4)

    print("KERNEL_OK")
</pallas_src>

<mosaic_0001>
module attributes {stable_mosaic.version = 11 : i64} {
  func.func @_conv_bn_kernel(%arg0: i32, %arg1: memref<1x18x576xf32, #tpu.memory_space<vmem>>, %arg2: memref<3x576x128xf32, #tpu.memory_space<vmem>>, %arg3: memref<1x128xf32, #tpu.memory_space<vmem>>, %arg4: memref<1x16x128xf32, #tpu.memory_space<vmem>>) attributes {dimension_semantics = [#tpu.dimension_semantics<parallel>], iteration_bounds = array<i64: 2>, scalar_prefetch = 0 : i64, scratch_operands = 0 : i64, tpu.core_type = #tpu.core_type<tc>, window_params = [{transform_indices = @transform_0, window_bounds = array<i64: 1, 18, 576>}, {pipeline_mode = #tpu.pipeline_mode<synchronous>, transform_indices = @transform_1, window_bounds = array<i64: 3, 576, 128>}, {pipeline_mode = #tpu.pipeline_mode<synchronous>, transform_indices = @transform_2, window_bounds = array<i64: 1, 128>}, {transform_indices = @transform_3, window_bounds = array<i64: 1, 16, 128>}]} {
    %c0 = arith.constant 0 : index
    %c0_0 = arith.constant 0 : index
    %c0_1 = arith.constant 0 : index
    %0 = vector.load %arg1[%c0, %c0_0, %c0_1] : memref<1x18x576xf32, #tpu.memory_space<vmem>>, vector<1x18x576xf32>
    %1 = vector.shape_cast %0 : vector<1x18x576xf32> to vector<18x576xf32>
    %2 = vector.extract_strided_slice %1 {offsets = [0, 0], sizes = [16, 576], strides = [1, 1]} : vector<18x576xf32> to vector<16x576xf32>
    %c0_2 = arith.constant 0 : index
    %c0_3 = arith.constant 0 : index
    %c0_4 = arith.constant 0 : index
    %3 = vector.load %arg2[%c0_2, %c0_3, %c0_4] : memref<3x576x128xf32, #tpu.memory_space<vmem>>, vector<1x576x128xf32>
    %4 = vector.shape_cast %3 : vector<1x576x128xf32> to vector<576x128xf32>
    %cst = arith.constant dense<0.000000e+00> : vector<16x128xf32>
    %5 = tpu.matmul %2, %4, %cst {dimension_numbers = #tpu.dot_dimension_numbers<[1], [0], [0], [1], [0, 0, 1, 1], [], []>} : vector<16x576xf32>, vector<576x128xf32>, vector<16x128xf32> -> vector<16x128xf32>
    %6 = vector.extract_strided_slice %1 {offsets = [1, 0], sizes = [16, 576], strides = [1, 1]} : vector<18x576xf32> to vector<16x576xf32>
    %c1 = arith.constant 1 : index
    %c0_5 = arith.constant 0 : index
    %c0_6 = arith.constant 0 : index
    %7 = vector.load %arg2[%c1, %c0_5, %c0_6] : memref<3x576x128xf32, #tpu.memory_space<vmem>>, vector<1x576x128xf32>
    %8 = vector.shape_cast %7 : vector<1x576x128xf32> to vector<576x128xf32>
    %cst_7 = arith.constant dense<0.000000e+00> : vector<16x128xf32>
    %9 = tpu.matmul %6, %8, %cst_7 {dimension_numbers = #tpu.dot_dimension_numbers<[1], [0], [0], [1], [0, 0, 1, 1], [], []>} : vector<16x576xf32>, vector<576x128xf32>, vector<16x128xf32> -> vector<16x128xf32>
    %10 = arith.addf %5, %9 : vector<16x128xf32>
    %11 = vector.extract_strided_slice %1 {offsets = [2, 0], sizes = [16, 576], strides = [1, 1]} : vector<18x576xf32> to vector<16x576xf32>
    %c2 = arith.constant 2 : index
    %c0_8 = arith.constant 0 : index
    %c0_9 = arith.constant 0 : index
    %12 = vector.load %arg2[%c2, %c0_8, %c0_9] : memref<3x576x128xf32, #tpu.memory_space<vmem>>, vector<1x576x128xf32>
    %13 = vector.shape_cast %12 : vector<1x576x128xf32> to vector<576x128xf32>
    %cst_10 = arith.constant dense<0.000000e+00> : vector<16x128xf32>
    %14 = tpu.matmul %11, %13, %cst_10 {dimension_numbers = #tpu.dot_dimension_numbers<[1], [0], [0], [1], [0, 0, 1, 1], [], []>} : vector<16x576xf32>, vector<576x128xf32>, vector<16x128xf32> -> vector<16x128xf32>
    %15 = arith.addf %10, %14 : vector<16x128xf32>
    %c0_11 = arith.constant 0 : index
    %c0_12 = arith.constant 0 : index
    %16 = vector.load %arg3[%c0_11, %c0_12] : memref<1x128xf32, #tpu.memory_space<vmem>>, vector<1x128xf32>
    %17 = vector.broadcast %16 : vector<1x128xf32> to vector<16x128xf32>
    %18 = arith.addf %15, %17 : vector<16x128xf32>
    %c0_13 = arith.constant 0 : index
    %c0_14 = arith.constant 0 : index
    %c0_15 = arith.constant 0 : index
    %19 = vector.load %arg4[%c0_13, %c0_14, %c0_15] : memref<1x16x128xf32, #tpu.memory_space<vmem>>, vector<1x16x128xf32>
    %20 = vector.shape_cast %19 : vector<1x16x128xf32> to vector<16x128xf32>
    %21 = vector.shape_cast %18 : vector<16x128xf32> to vector<1x16x128xf32>
    tpu.vector_store %arg4[%c0_13, %c0_14, %c0_15], %21 {strides = array<i32>} : memref<1x16x128xf32, #tpu.memory_space<vmem>>, vector<1x16x128xf32>,
    return
  }
  func.func @transform_0(%arg0: i32) -> (i32, i32, i32) {
    %c0_i32 = arith.constant 0 : i32
    %c0_i32_0 = arith.constant 0 : i32
    %c0_i32_1 = arith.constant 0 : i32
    return %arg0, %c0_i32, %c0_i32_0 : i32, i32, i32
  }
  func.func @transform_1(%arg0: i32) -> (i32, i32, i32) {
    %c0_i32 = arith.constant 0 : i32
    %c0_i32_0 = arith.constant 0 : i32
    %c0_i32_1 = arith.constant 0 : i32
    %c0_i32_2 = arith.constant 0 : i32
    return %c0_i32, %c0_i32_0, %c0_i32_1 : i32, i32, i32
  }
  func.func @transform_2(%arg0: i32) -> (i32, i32) {
    %c0_i32 = arith.constant 0 : i32
    %c0_i32_0 = arith.constant 0 : i32
    %c0_i32_1 = arith.constant 0 : i32
    return %c0_i32, %c0_i32_0 : i32, i32
  }
  func.func @transform_3(%arg0: i32) -> (i32, i32, i32) {
    %c0_i32 = arith.constant 0 : i32
    %c0_i32_0 = arith.constant 0 : i32
    %c0_i32_1 = arith.constant 0 : i32
    return %arg0, %c0_i32, %c0_i32_0 : i32, i32, i32
  }
}

</mosaic_0001>

<bundles_post_ra>
// kernel: tile.9
= control target key start
LH: loop header
LB: loop body
LE: loop exit
PB: predicated region body
PF: predicated region fallthrough
CT: control target
= control target key end

     0   :  { %s133_s10 = smov 120   ;;  %s134_s11 = smov 104   ;;  %vm3_vm0 = vcmask 64512   ;;  %vm9_vm1 = vcmask 1048512   ;;  %vm15_vm2 = vcmask 982912   ;;  %vm21_vm3 = vcmask 917312   ;;  %s209_s0 = inlined_call_operand.vmem [shape: f32[16,8], index: 0, kind: input, shape index: {}]   ;;  %s210_s1 = inlined_call_operand.vmem [shape: f32[1,128], index: 1, kind: output, shape index: {}]  }
   0x1   :  { %v103_v0 = vld [vmem:[%s209_s0 + $0xf] sm:$0x1]   ;;  %v105_v1 = vld [vmem:[%s209_s0 + $0xd] sm:$0x1]   ;;  %v104_v2 = vld [vmem:[%s209_s0 + $0xe] sm:$0x1]  }
   0x2   :  { %7 = vrot.lane.b32.xlu0 %v103_v0, %s133_s10  ;;  %19 = vrot.lane.b32.xlu1 %v105_v1, %s134_s11  ;;  %v106_v3 = vld [vmem:[%s209_s0 + $0xc] sm:$0x1]   ;;  %s135_s16 = smov 112   ;;  %s136_s17 = smov 96   ;;  %v107_v4 = vld [vmem:[%s209_s0 + $0xb] sm:$0x1]  }
   0x3   :  { %v108_v5 = vld [vmem:[%s209_s0 + $0xa] sm:$0x1]   ;;  %v2_v6 = vld [vmem:[%s209_s0] sm:$0x1]   ;;  %s137_s24 = smov 88   ;;  %s138_s25 = smov 80  }
   0x4   :  { %4 = vst.msk [vmem:[#allocation0] sm:$0x1] %vm3_vm0, %v2_v6   ;;  %v109_v7 = vld [vmem:[%s209_s0 + $0x9] sm:$0x1]   ;;  %v110_v8 = vld [vmem:[%s209_s0 + $0x8] sm:$0x1]  }
   0x5   :  { %s139_s30 = smov 72   ;;  %s140_s2 = smov 64   ;;  %v111_v9 = vld [vmem:[%s209_s0 + $0x7] sm:$0x1]   ;;  %v112_v10 = vld [vmem:[%s209_s0 + $0x6] sm:$0x1]  }
   0x6   :  { %13 = vrot.lane.b32.xlu0 %v104_v2, %s135_s16  ;;  %25 = vrot.lane.b32.xlu1 %v106_v3, %s136_s17  ;;  %s141_s7 = smov 56   ;;  %s142_s8 = smov 48   ;;  %v113_v11 = vld [vmem:[%s209_s0 + $0x5] sm:$0x1]   ;;  %v114_v12 = vld [vmem:[%s209_s0 + $0x4] sm:$0x1]  }
   0x7   :  { %s143_s13 = smov 40   ;;  %s144_s14 = smov 32   ;;  %v115_v13 = vld [vmem:[%s209_s0 + $0x3] sm:$0x1]   ;;  %v116_v14 = vld [vmem:[%s209_s0 + $0x2] sm:$0x1]  }
   0x8   :  { %s145_s19 = smov 24   ;;  %s146_s20 = smov 16   ;;  %v117_v15 = vld [vmem:[%s209_s0 + $0x1] sm:$0x1]   ;;  %vm27_vm4 = vcmask 851712   ;;  %vm33_vm5 = vcmask 786112  }
   0x9   :  { %s147_s0 = smov 8   ;;  %vm39_vm6 = vcmask 720512   ;;  %vm45_vm7 = vcmask 654912   ;;  %vm51_vm8 = vcmask 589312   ;;  %vm57_vm9 = vcmask 523712  }
   0xa   :  { %31 = vrot.lane.b32.xlu0 %v107_v4, %s137_s24  ;;  %37 = vrot.lane.b32.xlu1 %v108_v5, %s138_s25  ;;  %vm63_vm10 = vcmask 458112   ;;  %vm69_vm11 = vcmask 392512   ;;  %vm75_vm12 = vcmask 326912   ;;  %vm81_vm13 = vcmask 261312  }
   0xb   :  { %vm87_vm14 = vcmask 195712   ;;  %vm93_vm15 = vcmask 130112  }
   0xe   :  { %43 = vrot.lane.b32.xlu0 %v109_v7, %s139_s30  ;;  %49 = vrot.lane.b32.xlu1 %v110_v8, %s140_s2 }
  0x12   :  { %55 = vrot.lane.b32.xlu0 %v111_v9, %s141_s7  ;;  %61 = vrot.lane.b32.xlu1 %v112_v10, %s142_s8 }
  0x16   :  { %67 = vrot.lane.b32.xlu0 %v113_v11, %s143_s13  ;;  %73 = vrot.lane.b32.xlu1 %v114_v12, %s144_s14 }
  0x1a   :  { %79 = vrot.lane.b32.xlu0 %v115_v13, %s145_s19  ;;  %85 = vrot.lane.b32.xlu1 %v116_v14, %s146_s20 }
  0x1e   :  { %91 = vrot.lane.b32.xlu0 %v117_v15, %s147_s0 }
  0x74   :  { %v8_v16 = vpop.permute.xlu0 %7   ;;  %v20_v17 = vpop.permute.xlu1 %19  }
  0x75   :  { %10 = vst.msk [vmem:[#allocation0] sm:$0x1] %vm9_vm1, %v8_v16  }
  0x78   :  { %v14_v18 = vpop.permute.xlu0 %13   ;;  %v26_v19 = vpop.permute.xlu1 %25  }
  0x79   :  { %16 = vst.msk [vmem:[#allocation0] sm:$0x1] %vm15_vm2, %v14_v18  }
  0x7a   :  { %22 = vst.msk [vmem:[#allocation0] sm:$0x1] %vm21_vm3, %v20_v17  }
  0x7b   :  { %28 = vst.msk [vmem:[#allocation0] sm:$0x1] %vm27_vm4, %v26_v19  }
  0x7c   :  { %v32_v20 = vpop.permute.xlu0 %31   ;;  %v38_v21 = vpop.permute.xlu1 %37  }
  0x7d   :  { %34 = vst.msk [vmem:[#allocation0] sm:$0x1] %vm33_vm5, %v32_v20  }
  0x7e   :  { %40 = vst.msk [vmem:[#allocation0] sm:$0x1] %vm39_vm6, %v38_v21  }
  0x80   :  { %v44_v22 = vpop.permute.xlu0 %43   ;;  %v50_v23 = vpop.permute.xlu1 %49  }
  0x81   :  { %46 = vst.msk [vmem:[#allocation0] sm:$0x1] %vm45_vm7, %v44_v22  }
  0x82   :  { %52 = vst.msk [vmem:[#allocation0] sm:$0x1] %vm51_vm8, %v50_v23  }
  0x84   :  { %v56_v24 = vpop.permute.xlu0 %55   ;;  %v62_v25 = vpop.permute.xlu1 %61  }
  0x85   :  { %58 = vst.msk [vmem:[#allocation0] sm:$0x1] %vm57_vm9, %v56_v24  }
  0x86   :  { %64 = vst.msk [vmem:[#allocation0] sm:$0x1] %vm63_vm10, %v62_v25  }
  0x88   :  { %v68_v26 = vpop.permute.xlu0 %67   ;;  %v74_v27 = vpop.permute.xlu1 %73  }
  0x89   :  { %70 = vst.msk [vmem:[#allocation0] sm:$0x1] %vm69_vm11, %v68_v26  }
  0x8a   :  { %76 = vst.msk [vmem:[#allocation0] sm:$0x1] %vm75_vm12, %v74_v27  }
  0x8c   :  { %v80_v28 = vpop.permute.xlu0 %79   ;;  %v86_v29 = vpop.permute.xlu1 %85  }
  0x8d   :  { %82 = vst.msk [vmem:[#allocation0] sm:$0x1] %vm81_vm13, %v80_v28  }
  0x8e   :  { %88 = vst.msk [vmem:[#allocation0] sm:$0x1] %vm87_vm14, %v86_v29  }
  0x90   :  { %v92_v30 = vpop.permute.xlu0 %91  }
  0x91   :  { %94 = vst.msk [vmem:[#allocation0] sm:$0x1] %vm93_vm15, %v92_v30  }
  0x98   :  { %v99_v31 = vld [vmem:[#allocation0] sm:$0x1] }
  0x99   :  { %102 = vst [vmem:[%s210_s1] sm:$0x1] %v99_v31 }

// kernel: tile.8
= control target key start
LH: loop header
LB: loop body
LE: loop exit
PB: predicated region body
PF: predicated region fallthrough
CT: control target
= control target key end

     0   :  { %s28_s0 = inlined_call_operand.vmem [shape: f32[8], index: 0, kind: input, shape index: {}]   ;;  %s29_s1 = inlined_call_operand.vmem [shape: f32[16,8], index: 1, kind: output, shape index: {}]  }
   0x1   :  { %v4_v0 = vld [vmem:[%s28_s0] ss:$0 sm:$0xff] }
   0x2   :  { %5 = vst [vmem:[%s29_s1] sm:$0xff] %v4_v0  ;;  %8 = vst [vmem:[%s29_s1 + $0x8] sm:$0xff] %v4_v0 }

// kernel: downsample_forward.1
= control target key start
LH: loop header
LB: loop body
LE: loop exit
PB: predicated region body
PF: predicated region fallthrough
CT: control target
= control target key end

     0   :  { %s1757_s12 = smov 0   ;;  %s2582_s0 = inlined_call_operand.vmem [shape: f32[2,18,576], index: 0, kind: input, shape index: {}]   ;;  %s2583_s1 = inlined_call_operand.vmem [shape: f32[3,576,128], index: 1, kind: input, shape index: {}]   ;;  %s2584_s2 = inlined_call_operand.vmem [shape: f32[1,128], index: 2, kind: input, shape index: {}]   ;;  %s2585_s3 = inlined_call_operand.vmem [shape: f32[2,16,128], index: 3, kind: output, shape index: {}]  }
   0x1 LB: > { %s1243_s13 = sadd.s32 4294967295, %s1735_s12   ;;  %p1247_p0 = scmp.ge.s32.totalorder %s1735_s12, 1  ;;  %s1735_s12 = sphi %s1757_s12, %s13_s12  }
   0x2   : > { %p137_p1 = scmp.lt.s32.totalorder %s1735_s12, 3 }
   0x4   : > { %p138_p2 = pnand %p1247_p0, %p137_p1 }
   0x5   : > { %p1827_p3 = scmp.lt.s32.totalorder (!%p138_p2), %s1243_s13, 1 }
   0x6   : > { %141 = sbr.rel (%p138_p2) target bundleno = 356 (0x164), region = 32 }
   0xb   : > { %v1282_v0 = vld [vmem:[%s2583_s1 + $0x338] sm:$0xff]  ;;  %v1281_v4 = vld [vmem:[%s2583_s1 + $0x330] sm:$0xff]  ;;  %v1280_v8 = vld [vmem:[%s2583_s1 + $0x328] sm:$0xff]  ;;  %s2588_s13 = smov (!%p1827_p3, %s1243_s13), 1  ;;  %vm346_vm0 = vcmask 1046528   ;;  %vm912_vm1 = vcmask 1045504  }
   0xc   : > { %v1314_v1 = vld [vmem:[%s2583_s1 + $0x438] sm:$0xff]  ;;  %1405 = vmatprep.subr.mxu0 %v1282_v0  ;;  %v1313_v5 = vld [vmem:[%s2583_s1 + $0x430] sm:$0xff]  ;;  %v1312_v9 = vld [vmem:[%s2583_s1 + $0x428] sm:$0xff]  ;;  %s1720_s10 = smul.u32 120, %s2588_s13  ;;  %vm380_vm2 = vcmask 523264   ;;  %s1404_s27 = sshll.u32 %s2588_s13, 4 }
   0xd   : > { %v1266_v2 = vld [vmem:[%s2583_s1 + $0x2b8] sm:$0xff]  ;;  %1443 = vmatprep.subr.mxu1 %v1314_v1  ;;  %v1265_v6 = vld [vmem:[%s2583_s1 + $0x2b0] sm:$0xff]  ;;  %v1264_v10 = vld [vmem:[%s2583_s1 + $0x2a8] sm:$0xff]  ;;  %s170_s5 = scalar_lea.vmem %s2585_s3, %s1404_s27 }
   0xe   : > { %v1298_v3 = vld [vmem:[%s2583_s1 + $0x3b8] sm:$0xff]  ;;  %1406 = vmatpush3.msra.mxu0 %v1266_v2  ;;  %v1297_v7 = vld [vmem:[%s2583_s1 + $0x3b0] sm:$0xff]  ;;  %v1296_v11 = vld [vmem:[%s2583_s1 + $0x3a8] sm:$0xff]  ;;  %s1919_s8 = scalar_lea.vmem %s2582_s0, %s1720_s10 }
   0xf   : > { %1444 = vmatpush3.msra.mxu1 %v1298_v3  ;;  %1407 = vmatprep.subr.mxu0 %v1281_v4  ;;  %v1279_v12 = vld [vmem:[%s2583_s1 + $0x320] sm:$0xff]  ;;  %v1278_v16 = vld [vmem:[%s2583_s1 + $0x318] sm:$0xff]  ;;  %v1277_v20 = vld [vmem:[%s2583_s1 + $0x310] sm:$0xff] }
  0x10   : > { %1445 = vmatprep.subr.mxu1 %v1313_v5  ;;  %1408 = vmatpush3.msra.mxu0 %v1265_v6  ;;  %v1311_v13 = vld [vmem:[%s2583_s1 + $0x420] sm:$0xff]  ;;  %v1310_v17 = vld [vmem:[%s2583_s1 + $0x418] sm:$0xff]  ;;  %v1309_v21 = vld [vmem:[%s2583_s1 + $0x410] sm:$0xff] }
  0x11   : > { %1446 = vmatpush3.msra.mxu1 %v1297_v7  ;;  %1409 = vmatprep.subr.mxu0 %v1280_v8  ;;  %v1263_v14 = vld [vmem:[%s2583_s1 + $0x2a0] sm:$0xff]  ;;  %v1262_v18 = vld [vmem:[%s2583_s1 + $0x298] sm:$0xff]  ;;  %v1261_v22 = vld [vmem:[%s2583_s1 + $0x290] sm:$0xff] }
  0x12   : > { %1447 = vmatprep.subr.mxu1 %v1312_v9  ;;  %v1295_v15 = vld [vmem:[%s2583_s1 + $0x3a0] sm:$0xff]  ;;  %1410 = vmatpush3.msra.mxu0 %v1264_v10  ;;  %v1294_v19 = vld [vmem:[%s2583_s1 + $0x398] sm:$0xff]  ;;  %v1293_v23 = vld [vmem:[%s2583_s1 + $0x390] sm:$0xff] }
  0x13   : > { %1448 = vmatpush3.msra.mxu1 %v1296_v11  ;;  %1411 = vmatprep.subr.mxu0 %v1279_v12  ;;  %v1276_v24 = vld [vmem:[%s2583_s1 + $0x308] sm:$0xff]  ;;  %v1275_v28 = vld [vmem:[%s2583_s1 + $0x300] sm:$0xff]  ;;  %v1274_v32 = vld [vmem:[%s2583_s1 + $0x2f8] sm:$0xff] }
  0x14   : > { %1449 = vmatprep.subr.mxu1 %v1311_v13  ;;  %1412 = vmatpush3.msra.mxu0 %v1263_v14  ;;  %v1308_v25 = vld [vmem:[%s2583_s1 + $0x408] sm:$0xff]  ;;  %v1307_v29 = vld [vmem:[%s2583_s1 + $0x400] sm:$0xff]  ;;  %v1306_v33 = vld [vmem:[%s2583_s1 + $0x3f8] sm:$0xff] }
  0x15   : > { %1450 = vmatpush3.msra.mxu1 %v1295_v15  ;;  %1413 = vmatprep.subr.mxu0 %v1278_v16  ;;  %v1260_v26 = vld [vmem:[%s2583_s1 + $0x288] sm:$0xff]  ;;  %v1259_v30 = vld [vmem:[%s2583_s1 + $0x280] sm:$0xff]  ;;  %v1258_v34 = vld [vmem:[%s2583_s1 + $0x278] sm:$0xff] }
  0x16   : > { %1451 = vmatprep.subr.mxu1 %v1310_v17  ;;  %1414 = vmatpush3.msra.mxu0 %v1262_v18  ;;  %v1292_v27 = vld [vmem:[%s2583_s1 + $0x388] sm:$0xff]  ;;  %v1291_v31 = vld [vmem:[%s2583_s1 + $0x380] sm:$0xff]  ;;  %v1290_v35 = vld [vmem:[%s2583_s1 + $0x378] sm:$0xff] }
  0x17   : > { %1452 = vmatpush3.msra.mxu1 %v1294_v19  ;;  %1415 = vmatprep.subr.mxu0 %v1277_v20  ;;  %v1273_v36 = vld [vmem:[%s2583_s1 + $0x2f0] sm:$0xff]  ;;  %v1272_v40 = vld [vmem:[%s2583_s1 + $0x2e8] sm:$0xff]  ;;  %v1271_v44 = vld [vmem:[%s2583_s1 + $0x2e0] sm:$0xff] }
  0x18   : > { %1453 = vmatprep.subr.mxu1 %v1309_v21  ;;  %1416 = vmatpush3.msra.mxu0 %v1261_v22  ;;  %v1305_v37 = vld [vmem:[%s2583_s1 + $0x3f0] sm:$0xff]  ;;  %v1304_v41 = vld [vmem:[%s2583_s1 + $0x3e8] sm:$0xff]  ;;  %v1303_v45 = vld [vmem:[%s2583_s1 + $0x3e0] sm:$0xff] }
  0x19   : > { %1454 = vmatpush3.msra.mxu1 %v1293_v23  ;;  %1417 = vmatprep.subr.mxu0 %v1276_v24  ;;  %v1257_v38 = vld [vmem:[%s2583_s1 + $0x270] sm:$0xff]  ;;  %v1256_v42 = vld [vmem:[%s2583_s1 + $0x268] sm:$0xff]  ;;  %v1255_v46 = vld [vmem:[%s2583_s1 + $0x260] sm:$0xff] }
  0x1a   : > { %1455 = vmatprep.subr.mxu1 %v1308_v25  ;;  %1418 = vmatpush3.msra.mxu0 %v1260_v26  ;;  %v1289_v39 = vld [vmem:[%s2583_s1 + $0x370] sm:$0xff]  ;;  %v1288_v43 = vld [vmem:[%s2583_s1 + $0x368] sm:$0xff]  ;;  %v1287_v47 = vld [vmem:[%s2583_s1 + $0x360] sm:$0xff] }
  0x1b   : > { %1456 = vmatpush3.msra.mxu1 %v1292_v27  ;;  %1419 = vmatprep.subr.mxu0 %v1275_v28  ;;  %v1270_v48 = vld [vmem:[%s2583_s1 + $0x2d8] sm:$0xff]  ;;  %v1269_v52 = vld [vmem:[%s2583_s1 + $0x2d0] sm:$0xff]  ;;  %v1943_v53 = vld [vmem:[%s1919_s8 + $0x8] sm:$0xff] }
  0x1c   : > { %1457 = vmatprep.subr.mxu1 %v1307_v29  ;;  %1420 = vmatpush3.msra.mxu0 %v1259_v30  ;;  %v1302_v49 = vld [vmem:[%s2583_s1 + $0x3d8] sm:$0xff]  ;;  %v1946_v54 = vld [vmem:[%s1919_s8 + $0x30] sm:$0xff]  ;;  %v1955_v57 = vld [vmem:[%s1919_s8 + $0x40] sm:$0xff]  ;;  %v916_v59 = vrot.slane %v1943_v53, 2  ;;  %v350_v1 = vrot.slane %v1943_v53, 1 }
  0x1d   : > { %1458 = vmatpush3.msra.mxu1 %v1291_v31  ;;  %1421 = vmatprep.subr.mxu0 %v1274_v32  ;;  %v1254_v50 = vld [vmem:[%s2583_s1 + $0x258] sm:$0xff]  ;;  %v1301_v56 = vld [vmem:[%s2583_s1 + $0x3d0] sm:$0xff]  ;;  %v1958_v58 = vld [vmem:[%s1919_s8] sm:$0xff]  ;;  %v351_v2 = vrot.slane %v1946_v54, 1  ;;  %v917_v4 = vrot.slane %v1946_v54, 2  ;;  %v357_v7 = vrot.slane %v1955_v57, 1 }
  0x1e   : > { %1459 = vmatprep.subr.mxu1 %v1306_v33  ;;  %1422 = vmatpush3.msra.mxu0 %v1258_v34  ;;  %v1286_v51 = vld [vmem:[%s2583_s1 + $0x358] sm:$0xff]  ;;  %v1962_v60 = vld [vmem:[%s1919_s8 + $0x28] sm:$0xff]  ;;  %v1965_v61 = vld [vmem:[%s1919_s8 + $0x10] sm:$0xff]  ;;  %v347_v8 = vrot.slane %v1958_v58, 1  ;;  %v913_v9 = vrot.slane %v1958_v58, 2 }
  0x1f   : > { %1460 = vmatpush3.msra.mxu1 %v1290_v35  ;;  %1423 = vmatprep.subr.mxu0 %v1273_v36  ;;  %v1949_v55 = vld [vmem:[%s1919_s8 + $0x18] sm:$0xff]  ;;  %v1253_v63 = vld [vmem:[%s2583_s1 + $0x250] sm:$0xff]  ;;  %v1268_v5 = vld [vmem:[%s2583_s1 + $0x2c8] sm:$0xff]  ;;  %v914_v10 = vrot.slane %v1962_v60, 2  ;;  %v348_v13 = vrot.slane %v1962_v60, 1  ;;  %v353_v14 = vrot.slane %v1965_v61, 1  ;;  %v2000_v16 = vsel %vm912_vm1, %v916_v59, %v917_v4 }
  0x20   : > { %1461 = vmatprep.subr.mxu1 %v1305_v37  ;;  %1424 = vmatpush3.msra.mxu0 %v1257_v38  ;;  %v1968_v62 = vld [vmem:[%s1919_s8 + $0x38] sm:$0xff]  ;;  %v1285_v0 = vld [vmem:[%s2583_s1 + $0x350] sm:$0xff]  ;;  %v356_v3 = vrot.slane %v1949_v55, 1  ;;  %v1300_v6 = vld [vmem:[%s2583_s1 + $0x3c8] sm:$0xff]  ;;  %v352_v21 = vsel %vm346_vm0, %v350_v1, %v351_v2 }
  0x21   : > { %1462 = vmatpush3.msra.mxu1 %v1289_v39  ;;  %1425 = vmatprep.subr.mxu0 %v1272_v40  ;;  %v1252_v11 = vld [vmem:[%s2583_s1 + $0x248] sm:$0xff]  ;;  %v354_v15 = vrot.slane %v1968_v62, 1  ;;  %v1267_v17 = vld [vmem:[%s2583_s1 + $0x2c0] sm:$0xff]  ;;  %v2009_v19 = vsel %vm912_vm1, %v913_v9, %v914_v10  ;;  %v2024_v24 = vld [vmem:[%s1919_s8 + $0x58] sm:$0x3]  ;;  %v349_v25 = vsel %vm346_vm0, %v347_v8, %v348_v13 }
  0x22   : > { %1463 = vmatprep.subr.mxu1 %v1304_v41  ;;  %1426 = vmatpush3.msra.mxu0 %v1256_v42  ;;  %v1284_v12 = vld [vmem:[%s2583_s1 + $0x348] sm:$0xff]  ;;  %v1299_v18 = vld [vmem:[%s2583_s1 + $0x3c0] sm:$0xff]  ;;  %v358_v23 = vsel %vm346_vm0, %v356_v3, %v357_v7  ;;  %v930_v27 = vrot.slane %v2024_v24, 2  ;;  %v1322_v28 = vld [vmem:[%s2583_s1 + $0x478] sm:$0xff] }
  0x23   : > { %1464 = vmatpush3.msra.mxu1 %v1288_v43  ;;  %1427 = vmatprep.subr.mxu0 %v1271_v44  ;;  %v1251_v20 = vld [vmem:[%s2583_s1 + $0x240] sm:$0xff]  ;;  %v355_v26 = vsel %vm346_vm0, %v353_v14, %v354_v15  ;;  %v217_v29 = vld [vmem:[%s2583_s1 + $0xf8] sm:$0xff]  ;;  %v181_v30 = vld [vmem:[%s1919_s8 + $0x50] sm:$0x3] }
  0x24   : > { %1465 = vmatprep.subr.mxu1 %v1303_v45  ;;  %1428 = vmatpush3.msra.mxu0 %v1255_v46  ;;  %v1283_v22 = vld [vmem:[%s2583_s1 + $0x340] sm:$0xff]  ;;  %v201_v31 = vld [vmem:[%s2583_s1 + $0x78] sm:$0xff]  ;;  %v1321_v32 = vld [vmem:[%s2583_s1 + $0x470] sm:$0xff]  ;;  %v2047_v33 = vsel %vm912_vm1, %v917_v4, %v930_v27  ;;  %v928_v34 = vrot.slane %v181_v30, 2  ;;  %v362_v3 = vrot.slane %v181_v30, 1 }
  0x25   : > { %1466 = vmatpush3.msra.mxu1 %v1287_v47  ;;  %1429 = vmatprep.subr.mxu0 %v1270_v48  ;;  %v216_v35 = vld [vmem:[%s2583_s1 + $0xf0] sm:$0xff]  ;;  %v2056_v37 = vld [vmem:[%s1919_s8 + $0x20] sm:$0xff]  ;;  %v2059_v38 = vld [vmem:[%s1919_s8 + $0x68] sm:$0x3] }
  0x26   : > { %1467 = vmatprep.subr.mxu1 %v1302_v49  ;;  %1430 = vmatpush3.msra.mxu0 %v1254_v50  ;;  %v200_v36 = vld [vmem:[%s2583_s1 + $0x70] sm:$0xff]  ;;  %v2062_v39 = vld [vmem:[%s1919_s8 + $0x48] sm:$0xff]  ;;  %v2068_v41 = vsel %vm912_vm1, %v914_v10, %v928_v34  ;;  %v925_v42 = vrot.slane %v2056_v37, 2  ;;  %v2083_v48 = vld [vmem:[%s1919_s8 + $0x60] sm:$0x3] }
  0x27   : > { %1468 = vmatpush3.msra.mxu1 %v1286_v51  ;;  %1431 = vmatprep.subr.mxu0 %v1269_v52  ;;  %v2065_v40 = vld [vmem:[%s1919_s8 + $0x70] sm:$0x3]  ;;  %v1320_v43 = vld [vmem:[%s2583_s1 + $0x468] sm:$0xff]  ;;  %v926_v45 = vrot.slane %v2062_v39, 2  ;;  %v1319_v49 = vld [vmem:[%s2583_s1 + $0x460] sm:$0xff]  ;;  %v364_v51 = vrot.slane %v2024_v24, 1 }
  0x28   : > { %1469 = vmatprep.subr.mxu1 %v1301_v56  ;;  %1432 = vmatpush3.msra.mxu0 %v1253_v63  ;;  %v215_v44 = vld [vmem:[%s2583_s1 + $0xe8] sm:$0xff]  ;;  %v936_v46 = vrot.slane %v2065_v40, 2  ;;  %v214_v50 = vld [vmem:[%s2583_s1 + $0xe0] sm:$0xff]  ;;  %v368_v52 = vrot.slane %v2059_v38, 1  ;;  %v213_v1 = vld [vmem:[%s2583_s1 + $0xd8] sm:$0xff]  ;;  %v366_v4 = vrot.slane %v2083_v48, 1 }
  0x29   : > { %1470 = vmatpush3.msra.mxu1 %v1285_v0  ;;  %1433 = vmatprep.subr.mxu0 %v1268_v5  ;;  %v199_v47 = vld [vmem:[%s2583_s1 + $0x68] sm:$0xff]  ;;  %v2094_v56 = vsel %vm912_vm1, %v925_v42, %v926_v45  ;;  %v198_v63 = vld [vmem:[%s2583_s1 + $0x60] sm:$0xff]  ;;  %v1318_v0 = vld [vmem:[%s2583_s1 + $0x458] sm:$0xff]  ;;  %v360_v14 = vrot.slane %v2062_v39, 1 }
  0x2a   : > { %1471 = vmatprep.subr.mxu1 %v1300_v6  ;;  %1434 = vmatpush3.msra.mxu0 %v1252_v11  ;;  %v2097_v59 = vsel %vm912_vm1, %v926_v45, %v936_v46  ;;  %v197_v5 = vld [vmem:[%s2583_s1 + $0x58] sm:$0xff]  ;;  %v365_v6 = vsel %vm346_vm0, %v351_v2, %v364_v51  ;;  %v369_v8 = vsel %vm346_vm0, %v357_v7, %v368_v52  ;;  %v1317_v9 = vld [vmem:[%s2583_s1 + $0x450] sm:$0xff]  ;;  %v207_v34 = vld [vmem:[%s2583_s1 + $0xa8] sm:$0xff] }
  0x2b   : > { %1472 = vmatpush3.msra.mxu1 %v1284_v12  ;;  %1435 = vmatprep.subr.mxu0 %v1267_v17  ;;  %v212_v10 = vld [vmem:[%s2583_s1 + $0xd0] sm:$0xff]  ;;  %v363_v2 = vsel %vm346_vm0, %v348_v13, %v362_v3  ;;  %v367_v7 = vsel %vm346_vm0, %v354_v15, %v366_v4  ;;  %v359_v12 = vrot.slane %v2056_v37, 1  ;;  %v1316_v13 = vld [vmem:[%s2583_s1 + $0x448] sm:$0xff]  ;;  %v370_v17 = vrot.slane %v2065_v40, 1  ;;  %v193_v27 = vld [vmem:[%s2583_s1 + $0x38] sm:$0xff] }
  0x2c   : > { %1473 = vmatprep.subr.mxu1 %v1299_v18  ;;  %1436 = vmatpush3.msra.mxu0 %v1251_v20  ;;  %v196_v11 = vld [vmem:[%s2583_s1 + $0x50] sm:$0xff]  ;;  %v211_v15 = vld [vmem:[%s2583_s1 + $0xc8] sm:$0xff]  ;;  %v1315_v20 = vld [vmem:[%s2583_s1 + $0x440] sm:$0xff] }
  0x2d   : > { %449 = vmatprep.mubr.f32.mxu0 %v352_v21  ;;  %1474 = vmatpush3.msra.mxu1 %v1283_v22  ;;  %v195_v18 = vld [vmem:[%s2583_s1 + $0x48] sm:$0xff]  ;;  %v210_v21 = vld [vmem:[%s2583_s1 + $0xc0] sm:$0xff]  ;;  %v361_v22 = vsel %vm346_vm0, %v359_v12, %v360_v14  ;;  %v371_v24 = vsel %vm346_vm0, %v360_v14, %v370_v17  ;;  %v248_v30 = vld [vmem:[%s2583_s1 + $0x1f0] sm:$0xff] }
  0x2e   : > { %524 = vmatprep.mubr.f32.mxu1 %v358_v23  ;;  %450 = vmatmul.mubr.f32.vlgmr.msra.gmra.mxu0 %v349_v25  ;;  %v194_v23 = vld [vmem:[%s2583_s1 + $0x40] sm:$0xff]  ;;  %v209_v25 = vld [vmem:[%s2583_s1 + $0xb8] sm:$0xff]  ;;  %v231_v40 = vld [vmem:[%s2583_s1 + $0x168] sm:$0xff] }
  0x2f   : > { %525 = vmatmul.mubr.f32.vlgmr.msra.gmra.mxu1 %v355_v26  ;;  %1663 = vmatprep.subr.mxu0 %v1322_v28  ;;  %v249_v26 = vld [vmem:[%s2583_s1 + $0x1f8] sm:$0xff]  ;;  %v206_v42 = vld [vmem:[%s2583_s1 + $0xa0] sm:$0xff]  ;;  %v204_v51 = vld [vmem:[%s2583_s1 + $0x90] sm:$0xff] }
  0x30   : > { %1491 = vmatprep.subr.mxu1 %v217_v29  ;;  %1664 = vmatpush3.msra.mxu0 %v1322_v28  ;;  %v233_v28 = vld [vmem:[%s2583_s1 + $0x178] sm:$0xff]  ;;  %v208_v29 = vld [vmem:[%s2583_s1 + $0xb0] sm:$0xff]  ;;  %v230_v45 = vld [vmem:[%s2583_s1 + $0x160] sm:$0xff] }
  0x31   : > { %1492 = vmatpush3.msra.mxu1 %v201_v31  ;;  %1665 = vmatprep.subr.mxu0 %v1321_v32  ;;  %v192_v31 = vld [vmem:[%s2583_s1 + $0x30] sm:$0xff]  ;;  %v205_v46 = vld [vmem:[%s2583_s1 + $0x98] sm:$0xff]  ;;  %v243_v3 = vld [vmem:[%s2583_s1 + $0x1c8] sm:$0xff] }
  0x32   : > { %1493 = vmatprep.subr.mxu1 %v216_v35  ;;  %1666 = vmatpush3.msra.mxu0 %v1321_v32  ;;  %v232_v32 = vld [vmem:[%s2583_s1 + $0x170] sm:$0xff]  ;;  %v247_v35 = vld [vmem:[%s2583_s1 + $0x1e8] sm:$0xff]  ;;  %v238_v17 = vld [vmem:[%s2583_s1 + $0x1a0] sm:$0xff] }
  0x33   : > { %1494 = vmatpush3.msra.mxu1 %v200_v36  ;;  %1667 = vmatprep.subr.mxu0 %v1320_v43  ;;  %v191_v36 = vld [vmem:[%s2583_s1 + $0x28] sm:$0xff]  ;;  %v244_v52 = vld [vmem:[%s2583_s1 + $0x1d0] sm:$0xff] }
  0x34   : > { %1495 = vmatprep.subr.mxu1 %v215_v44  ;;  %1668 = vmatpush3.msra.mxu0 %v1320_v43  ;;  %v246_v43 = vld [vmem:[%s2583_s1 + $0x1e0] sm:$0xff]  ;;  %v187_v4 = vld [vmem:[%s2583_s1 + $0x8] sm:$0xff]  ;;  %v240_v12 = vld [vmem:[%s2583_s1 + $0x1b0] sm:$0xff] }
  0x35   : > { %1496 = vmatpush3.msra.mxu1 %v199_v47  ;;  %1669 = vmatprep.subr.mxu0 %v1319_v49  ;;  %v190_v44 = vld [vmem:[%s2583_s1 + $0x20] sm:$0xff]  ;;  %v245_v47 = vld [vmem:[%s2583_s1 + $0x1d8] sm:$0xff]  ;;  %v256_v14 = vld [vmem:[%s2583_s1 + $0x230] sm:$0xff] }
  0x36   : > { %1497 = vmatprep.subr.mxu1 %v214_v50  ;;  %1670 = vmatpush3.msra.mxu0 %v1319_v49  ;;  %v189_v49 = vld [vmem:[%s2583_s1 + $0x18] sm:$0xff] }
  0x37   : > { %1498 = vmatpush3.msra.mxu1 %v198_v63  ;;  %1671 = vmatprep.subr.mxu0 %v1318_v0  ;;  %v229_v50 = vld [vmem:[%s2583_s1 + $0x158] sm:$0xff]  ;;  %v188_v63 = vld [vmem:[%s2583_s1 + $0x10] sm:$0xff] }
  0x38   : > { %1499 = vmatprep.subr.mxu1 %v213_v1  ;;  %1672 = vmatpush3.msra.mxu0 %v1318_v0  ;;  %v228_v0 = vld [vmem:[%s2583_s1 + $0x150] sm:$0xff]  ;;  %v203_v1 = vld [vmem:[%s2583_s1 + $0x88] sm:$0xff] }
  0x39   : > { %1500 = vmatpush3.msra.mxu1 %v197_v5  ;;  %454 = vmatprep.mubr.f32.mxu0 %v365_v6  ;;  %v227_v5 = vld [vmem:[%s2583_s1 + $0x148] sm:$0xff]  ;;  %v202_v6 = vld [vmem:[%s2583_s1 + $0x80] sm:$0xff] }
  0x3a   : > { %529 = vmatprep.mubr.f32.mxu1 %v369_v8  ;;  %1673 = vmatprep.subr.mxu0 %v1317_v9  ;;  %v242_v8 = vld [vmem:[%s2583_s1 + $0x1c0] sm:$0xff] }
  0x3b   : > { %1501 = vmatprep.subr.mxu1 %v212_v10  ;;  %455 = vmatmul.mubr.f32.gmra.mxu0 %v363_v2  ;;  %v226_v10 = vld [vmem:[%s2583_s1 + $0x140] sm:$0xff]  ;;  %v241_v2 = vld [vmem:[%s2583_s1 + $0x1b8] sm:$0xff] }
  0x3c   : > { %530 = vmatmul.mubr.f32.gmra.mxu1 %v367_v7  ;;  %1674 = vmatpush3.msra.mxu0 %v1317_v9  ;;  %v186_v9 = vld [vmem:[%s2583_s1] sm:$0xff]  ;;  %v257_v7 = vld [vmem:[%s2583_s1 + $0x238] sm:$0xff] }
  0x3d   : > { %1502 = vmatpush3.msra.mxu1 %v196_v11  ;;  %1675 = vmatprep.subr.mxu0 %v1316_v13  ;;  %v225_v11 = vld [vmem:[%s2583_s1 + $0x138] sm:$0xff] }
  0x3e   : > { %1503 = vmatprep.subr.mxu1 %v211_v15  ;;  %1676 = vmatpush3.msra.mxu0 %v1316_v13  ;;  %v255_v13 = vld [vmem:[%s2583_s1 + $0x228] sm:$0xff] }
  0x3f   : > { %1504 = vmatpush3.msra.mxu1 %v195_v18  ;;  %1677 = vmatprep.subr.mxu0 %v1315_v20  ;;  %v223_v15 = vld [vmem:[%s2583_s1 + $0x128] sm:$0xff]  ;;  %v254_v18 = vld [vmem:[%s2583_s1 + $0x220] sm:$0xff] }
  0x40   : > { %1505 = vmatprep.subr.mxu1 %v210_v21  ;;  %1678 = vmatpush3.msra.mxu0 %v1315_v20  ;;  %v237_v20 = vld [vmem:[%s2583_s1 + $0x198] sm:$0xff] }
  0x41   : > { %1679 = vmatprep.mubr.msk.f32.mxu0 %vm380_vm2, %v361_v22  ;;  %1506 = vmatpush3.msra.mxu1 %v194_v23  ;;  %v253_v21 = vld [vmem:[%s2583_s1 + $0x218] sm:$0xff]  ;;  %v236_v22 = vld [vmem:[%s2583_s1 + $0x190] sm:$0xff] }
  0x42   : > { %1680 = vmatmul.mubr.msk.f32.vlgmr.msra.gmra.mxu0 %vm380_vm2, %v371_v24  ;;  %1507 = vmatprep.subr.mxu1 %v209_v25  ;;  %v252_v23 = vld [vmem:[%s2583_s1 + $0x210] sm:$0xff]  ;;  %v235_v25 = vld [vmem:[%s2583_s1 + $0x188] sm:$0xff] }
  0x43   : > { %1529 = vmatprep.subr.mxu0 %v249_v26  ;;  %1508 = vmatpush3.msra.mxu1 %v193_v27  ;;  %v220_v24 = vld [vmem:[%s2583_s1 + $0x110] sm:$0xff]  ;;  %v251_v26 = vld [vmem:[%s2583_s1 + $0x208] sm:$0xff] }
  0x44   : > { %1530 = vmatpush3.msra.mxu0 %v233_v28  ;;  %1509 = vmatprep.subr.mxu1 %v208_v29  ;;  %v219_v27 = vld [vmem:[%s2583_s1 + $0x108] sm:$0xff]  ;;  %v234_v28 = vld [vmem:[%s2583_s1 + $0x180] sm:$0xff] }
  0x45   : > { %1531 = vmatprep.subr.mxu0 %v248_v30  ;;  %1510 = vmatpush3.msra.mxu1 %v192_v31  ;;  %v250_v29 = vld [vmem:[%s2583_s1 + $0x200] sm:$0xff]  ;;  %v1358_v31 = vld [vmem:[%s2583_s1 + $0x578] sm:$0xff] }
  0x46   : > { %1532 = vmatpush3.msra.mxu0 %v232_v32  ;;  %1511 = vmatprep.subr.mxu1 %v207_v34  ;;  %v218_v30 = vld [vmem:[%s2583_s1 + $0x100] sm:$0xff]  ;;  %v1390_v32 = vld [vmem:[%s2583_s1 + $0x678] sm:$0xff] }
  0x47   : > { %1533 = vmatprep.subr.mxu0 %v247_v35  ;;  %1512 = vmatpush3.msra.mxu1 %v191_v36  ;;  %v1342_v34 = vld [vmem:[%s2583_s1 + $0x4f8] sm:$0xff]  ;;  %v1357_v36 = vld [vmem:[%s2583_s1 + $0x570] sm:$0xff] }
  0x48   : > { %1534 = vmatpush3.msra.mxu0 %v231_v40  ;;  %1513 = vmatprep.subr.mxu1 %v206_v42  ;;  %v1374_v35 = vld [vmem:[%s2583_s1 + $0x5f8] sm:$0xff]  ;;  %v1389_v40 = vld [vmem:[%s2583_s1 + $0x670] sm:$0xff] }
  0x49   : > { %1535 = vmatprep.subr.mxu0 %v246_v43  ;;  %1514 = vmatpush3.msra.mxu1 %v190_v44  ;;  %v1341_v42 = vld [vmem:[%s2583_s1 + $0x4f0] sm:$0xff]  ;;  %v1356_v43 = vld [vmem:[%s2583_s1 + $0x568] sm:$0xff] }
  0x4a   : > { %1536 = vmatpush3.msra.mxu0 %v230_v45  ;;  %1515 = vmatprep.subr.mxu1 %v205_v46  ;;  %v1340_v44 = vld [vmem:[%s2583_s1 + $0x4e8] sm:$0xff]  ;;  %v1355_v46 = vld [vmem:[%s2583_s1 + $0x560] sm:$0xff] }
  0x4b   : > { %1537 = vmatprep.subr.mxu0 %v245_v47  ;;  %1516 = vmatpush3.msra.mxu1 %v189_v49  ;;  %v1372_v45 = vld [vmem:[%s2583_s1 + $0x5e8] sm:$0xff]  ;;  %v1387_v47 = vld [vmem:[%s2583_s1 + $0x660] sm:$0xff] }
  0x4c   : > { %1538 = vmatpush3.msra.mxu0 %v229_v50  ;;  %1517 = vmatprep.subr.mxu1 %v204_v51  ;;  %v1339_v49 = vld [vmem:[%s2583_s1 + $0x4e0] sm:$0xff]  ;;  %v1354_v51 = vld [vmem:[%s2583_s1 + $0x558] sm:$0xff] }
  0x4d   : > { %1539 = vmatprep.subr.mxu0 %v244_v52  ;;  %1518 = vmatpush3.msra.mxu1 %v188_v63  ;;  %v1371_v50 = vld [vmem:[%s2583_s1 + $0x5e0] sm:$0xff]  ;;  %v1386_v52 = vld [vmem:[%s2583_s1 + $0x658] sm:$0xff] }
  0x4e   : > { %1540 = vmatpush3.msra.mxu0 %v228_v0  ;;  %1519 = vmatprep.subr.mxu1 %v203_v1  ;;  %v1338_v63 = vld [vmem:[%s2583_s1 + $0x4d8] sm:$0xff]  ;;  %v1353_v1 = vld [vmem:[%s2583_s1 + $0x550] sm:$0xff] }
  0x4f   : > { %1541 = vmatprep.subr.mxu0 %v243_v3  ;;  %1520 = vmatpush3.msra.mxu1 %v187_v4  ;;  %v1370_v0 = vld [vmem:[%s2583_s1 + $0x5d8] sm:$0xff]  ;;  %v1385_v3 = vld [vmem:[%s2583_s1 + $0x650] sm:$0xff] }
  0x50   : > { %1542 = vmatpush3.msra.mxu0 %v227_v5  ;;  %1521 = vmatprep.subr.mxu1 %v202_v6  ;;  %v1337_v4 = vld [vmem:[%s2583_s1 + $0x4d0] sm:$0xff]  ;;  %v1352_v6 = vld [vmem:[%s2583_s1 + $0x548] sm:$0xff] }
  0x51   : > { %1543 = vmatprep.subr.mxu0 %v242_v8  ;;  %1522 = vmatpush3.msra.mxu1 %v186_v9  ;;  %v1369_v5 = vld [vmem:[%s2583_s1 + $0x5d0] sm:$0xff]  ;;  %v1384_v8 = vld [vmem:[%s2583_s1 + $0x648] sm:$0xff] }
  0x52   : > { %678 = vmatprep.mubr.f32.mxu1 %v1943_v53  ;;  %1544 = vmatpush3.msra.mxu0 %v226_v10  ;;  %v224_v53 = vld [vmem:[%s2583_s1 + $0x130] sm:$0xff]  ;;  %v1336_v9 = vld [vmem:[%s2583_s1 + $0x4c8] sm:$0xff] }
  0x53   : > { %679 = vmatmul.mubr.f32.vlgmr.msra.gmra.mxu1 %v1958_v58  ;;  %1545 = vmatprep.subr.mxu0 %v241_v2  ;;  %v239_v58 = vld [vmem:[%s2583_s1 + $0x1a8] sm:$0xff]  ;;  %v1351_v2 = vld [vmem:[%s2583_s1 + $0x540] sm:$0xff] }
  0x54   : > { %1682 = vmatprep.subr.mxu1 %v257_v7  ;;  %1546 = vmatpush3.msra.mxu0 %v225_v11  ;;  %v1368_v10 = vld [vmem:[%s2583_s1 + $0x5c8] sm:$0xff]  ;;  %v1335_v11 = vld [vmem:[%s2583_s1 + $0x4c0] sm:$0xff] }
  0x55   : > { %1683 = vmatpush3.msra.mxu1 %v257_v7  ;;  %1547 = vmatprep.subr.mxu0 %v240_v12  ;;  %v1383_v7 = vld [vmem:[%s2583_s1 + $0x640] sm:$0xff] }
  0x56   : > { %1684 = vmatprep.subr.mxu1 %v256_v14  ;;  %683 = vmatprep.mubr.f32.mxu1 %v1946_v54  ;;  %v222_v54 = vld [vmem:[%s2583_s1 + $0x120] sm:$0xff] }
  0x57   : > { %1548 = vmatpush3.msra.mxu0 %v224_v53  ;;  %1685 = vmatpush3.msra.mxu1 %v256_v14  ;;  %v1367_v12 = vld [vmem:[%s2583_s1 + $0x5c0] sm:$0xff]  ;;  %v1350_v14 = vld [vmem:[%s2583_s1 + $0x538] sm:$0xff] }
  0x58   : > { %1549 = vmatprep.subr.mxu0 %v239_v58  ;;  %684 = vmatmul.mubr.f32.gmra.mxu1 %v1962_v60  ;;  %v221_v60 = vld [vmem:[%s2583_s1 + $0x118] sm:$0xff] }
  0x59   : > { %1686 = vmatprep.subr.mxu1 %v255_v13  ;;  %1550 = vmatpush3.msra.mxu0 %v223_v15  ;;  %v1382_v53 = vld [vmem:[%s2583_s1 + $0x638] sm:$0xff]  ;;  %v1349_v15 = vld [vmem:[%s2583_s1 + $0x530] sm:$0xff] }
  0x5a   : > { %1687 = vmatpush3.msra.mxu1 %v255_v13  ;;  %1551 = vmatprep.subr.mxu0 %v238_v17  ;;  %v1334_v58 = vld [vmem:[%s2583_s1 + $0x4b8] sm:$0xff]  ;;  %v1381_v17 = vld [vmem:[%s2583_s1 + $0x630] sm:$0xff] }
  0x5b   : > { %1688 = vmatprep.subr.mxu1 %v254_v18  ;;  %1552 = vmatpush3.msra.mxu0 %v222_v54  ;;  %v1366_v13 = vld [vmem:[%s2583_s1 + $0x5b8] sm:$0xff]  ;;  %v1365_v54 = vld [vmem:[%s2583_s1 + $0x5b0] sm:$0xff] }
  0x5c   : > { %1689 = vmatpush3.msra.mxu1 %v254_v18  ;;  %1553 = vmatprep.subr.mxu0 %v237_v20  ;;  %v1333_v18 = vld [vmem:[%s2583_s1 + $0x4b0] sm:$0xff]  ;;  %v1348_v20 = vld [vmem:[%s2583_s1 + $0x528] sm:$0xff] }
  0x5d   : > { %1690 = vmatprep.subr.mxu1 %v253_v21  ;;  %1554 = vmatpush3.msra.mxu0 %v221_v60  ;;  %v1332_v60 = vld [vmem:[%s2583_s1 + $0x4a8] sm:$0xff] }
  0x5e   : > { %1691 = vmatpush3.msra.mxu1 %v253_v21  ;;  %1555 = vmatprep.subr.mxu0 %v236_v22  ;;  %v1380_v21 = vld [vmem:[%s2583_s1 + $0x628] sm:$0xff] }
  0x5f   : > { %1692 = vmatprep.subr.mxu1 %v252_v23  ;;  %1556 = vmatpush3.msra.mxu0 %v220_v24  ;;  %v1364_v22 = vld [vmem:[%s2583_s1 + $0x5a8] sm:$0xff]  ;;  %v1379_v24 = vld [vmem:[%s2583_s1 + $0x620] sm:$0xff] }
  0x60   : > { %1693 = vmatpush3.msra.mxu1 %v252_v23  ;;  %1557 = vmatprep.subr.mxu0 %v235_v25  ;;  %v1347_v23 = vld [vmem:[%s2583_s1 + $0x520] sm:$0xff] }
  0x61   : > { %1694 = vmatprep.subr.mxu1 %v251_v26  ;;  %1558 = vmatpush3.msra.mxu0 %v219_v27  ;;  %v1331_v25 = vld [vmem:[%s2583_s1 + $0x4a0] sm:$0xff]  ;;  %v1346_v27 = vld [vmem:[%s2583_s1 + $0x518] sm:$0xff] }
  0x62   : > { %1695 = vmatpush3.msra.mxu1 %v251_v26  ;;  %1559 = vmatprep.subr.mxu0 %v234_v28  ;;  %v1363_v26 = vld [vmem:[%s2583_s1 + $0x5a0] sm:$0xff]  ;;  %v1378_v28 = vld [vmem:[%s2583_s1 + $0x618] sm:$0xff] }
  0x63   : > { %1696 = vmatprep.subr.mxu1 %v250_v29  ;;  %1560 = vmatpush3.msra.mxu0 %v218_v30  ;;  %v1362_v30 = vld [vmem:[%s2583_s1 + $0x598] sm:$0xff] }
  0x64   : > { %753 = vmatprep.mubr.f32.mxu0 %v1949_v55  ;;  %1697 = vmatpush3.msra.mxu1 %v250_v29  ;;  %v1330_v29 = vld [vmem:[%s2583_s1 + $0x498] sm:$0xff] }
  0x65   : > { %754 = vmatmul.mubr.f32.vlgmr.msra.gmra.mxu0 %v1965_v61  ;;  %1698 = vmatprep.mubr.msk.f32.mxu1 %vm380_vm2, %v2056_v37  ;;  %v1373_v37 = vld [vmem:[%s2583_s1 + $0x5f0] sm:$0xff] }
  0x66   : > { %1577 = vmatprep.subr.mxu0 %v1358_v31  ;;  %1615 = vmatprep.subr.mxu1 %v1390_v32  ;;  %v1345_v31 = vld [vmem:[%s2583_s1 + $0x510] sm:$0xff] }
  0x67   : > { %1699 = vmatmul.mubr.msk.f32.vlgmr.msra.gmra.mxu1 %vm380_vm2, %v2062_v39  ;;  %1578 = vmatpush3.msra.mxu0 %v1342_v34  ;;  %v1388_v39 = vld [vmem:[%s2583_s1 + $0x668] sm:$0xff]  ;;  %v1377_v32 = vld [vmem:[%s2583_s1 + $0x610] sm:$0xff] }
  0x68   : > { %1616 = vmatpush3.msra.mxu1 %v1374_v35  ;;  %1579 = vmatprep.subr.mxu0 %v1357_v36  ;;  %v1329_v34 = vld [vmem:[%s2583_s1 + $0x490] sm:$0xff]  ;;  %v1344_v36 = vld [vmem:[%s2583_s1 + $0x508] sm:$0xff] }
  0x69   : > { %1617 = vmatprep.subr.mxu1 %v1389_v40  ;;  %758 = vmatprep.mubr.f32.mxu0 %v1955_v57  ;;  %v1361_v35 = vld [vmem:[%s2583_s1 + $0x590] sm:$0xff]  ;;  %v1376_v40 = vld [vmem:[%s2583_s1 + $0x608] sm:$0xff] }
  0x6a   : > { %1580 = vmatpush3.msra.mxu0 %v1341_v42  ;;  %1618 = vmatpush3.msra.mxu1 %v1373_v37  ;;  %v922_v42 = vrot.slane %v1949_v55, 2  ;;  %v923_v37 = vrot.slane %v1955_v57, 2  ;;  %v1343_v55 = vld [vmem:[%s2583_s1 + $0x500] sm:$0xff] }
  0x6b   : > { %759 = vmatmul.mubr.f32.gmra.mxu0 %v1968_v62  ;;  %1581 = vmatprep.subr.mxu0 %v1356_v43  ;;  %v1328_v43 = vld [vmem:[%s2583_s1 + $0x488] sm:$0xff]  ;;  %v1375_v57 = vld [vmem:[%s2583_s1 + $0x600] sm:$0xff] }
  0x6c   : > { %1619 = vmatprep.subr.mxu1 %v1388_v39  ;;  %1582 = vmatpush3.msra.mxu0 %v1340_v44  ;;  %v1360_v39 = vld [vmem:[%s2583_s1 + $0x588] sm:$0xff]  ;;  %v919_v44 = vrot.slane %v1965_v61, 2  ;;  %v934_v61 = vrot.slane %v2059_v38, 2  ;;  %v1398_v38 = vld [vmem:[%s2583_s1 + $0x6b8] sm:$0xff] }
  0x6d   : > { %1620 = vmatpush3.msra.mxu1 %v1372_v45  ;;  %1583 = vmatprep.subr.mxu0 %v1355_v46  ;;  %v920_v45 = vrot.slane %v1968_v62, 2  ;;  %v1327_v46 = vld [vmem:[%s2583_s1 + $0x480] sm:$0xff] }
  0x6e   : > { %1621 = vmatprep.subr.mxu1 %v1387_v47  ;;  %1584 = vmatpush3.msra.mxu0 %v1339_v49  ;;  %v1359_v62 = vld [vmem:[%s2583_s1 + $0x580] sm:$0xff]  ;;  %v924_v47 = vsel %vm912_vm1, %v922_v42, %v923_v37 }
  0x6f   : > { %1622 = vmatpush3.msra.mxu1 %v1371_v50  ;;  %1585 = vmatprep.subr.mxu0 %v1354_v51  ;;  %v921_v49 = vsel %vm912_vm1, %v919_v44, %v920_v45  ;;  %v932_v50 = vrot.slane %v2083_v48, 2  ;;  %v935_v51 = vsel %vm912_vm1, %v923_v37, %v934_v61  ;;  %v1396_v48 = vld [vmem:[%s2583_s1 + $0x6a8] sm:$0xff] }
  0x70   : > { %1623 = vmatprep.subr.mxu1 %v1386_v52  ;;  %1586 = vmatpush3.msra.mxu0 %v1338_v63  ;;  %v1397_v52 = vld [vmem:[%s2583_s1 + $0x6b0] sm:$0xff] }
  0x71   : > { %1624 = vmatpush3.msra.mxu1 %v1370_v0  ;;  %1587 = vmatprep.subr.mxu0 %v1353_v1  ;;  %v1393_v63 = vld [vmem:[%s2583_s1 + $0x690] sm:$0xff]  ;;  %v1391_v0 = vld [vmem:[%s2583_s1 + $0x680] sm:$0xff] }
  0x72   : > { %1625 = vmatprep.subr.mxu1 %v1385_v3  ;;  %1588 = vmatpush3.msra.mxu0 %v1337_v4 }
  0x73   : > { %1626 = vmatpush3.msra.mxu1 %v1369_v5  ;;  %1589 = vmatprep.subr.mxu0 %v1352_v6 }
  0x74   : > { %1627 = vmatprep.subr.mxu1 %v1384_v8  ;;  %1590 = vmatpush3.msra.mxu0 %v1336_v9 }
  0x75   : > { %1628 = vmatpush3.msra.mxu1 %v1368_v10  ;;  %1591 = vmatprep.subr.mxu0 %v1351_v2 }
  0x76   : > { %1629 = vmatprep.subr.mxu1 %v1383_v7  ;;  %1592 = vmatpush3.msra.mxu0 %v1335_v11 }
  0x77   : > { %1630 = vmatpush3.msra.mxu1 %v1367_v12  ;;  %1593 = vmatprep.subr.mxu0 %v1350_v14 }
  0x78   : > { %1631 = vmatprep.subr.mxu1 %v1382_v53  ;;  %1594 = vmatpush3.msra.mxu0 %v1334_v58 }
  0x79   : > { %1632 = vmatpush3.msra.mxu1 %v1366_v13  ;;  %1595 = vmatprep.subr.mxu0 %v1349_v15 }
  0x7a   : > { %1633 = vmatprep.subr.mxu1 %v1381_v17  ;;  %1596 = vmatpush3.msra.mxu0 %v1333_v18 }
  0x7b   : > { %1634 = vmatpush3.msra.mxu1 %v1365_v54  ;;  %1597 = vmatprep.subr.mxu0 %v1348_v20 }
  0x7c   : > { %1635 = vmatprep.subr.mxu1 %v1380_v21  ;;  %1598 = vmatpush3.msra.mxu0 %v1332_v60 }
  0x7d   : > { %1636 = vmatpush3.msra.mxu1 %v1364_v22  ;;  %1599 = vmatprep.subr.mxu0 %v1347_v23 }
  0x7e   : > { %1637 = vmatprep.subr.mxu1 %v1379_v24  ;;  %1600 = vmatpush3.msra.mxu0 %v1331_v25 }
  0x7f   : > { %1638 = vmatpush3.msra.mxu1 %v1363_v26  ;;  %1601 = vmatprep.subr.mxu0 %v1346_v27 }
  0x80   : > { %1639 = vmatprep.subr.mxu1 %v1378_v28  ;;  %1602 = vmatpush3.msra.mxu0 %v1330_v29 }
  0x81   : > { %1640 = vmatpush3.msra.mxu1 %v1362_v30  ;;  %1603 = vmatprep.subr.mxu0 %v1345_v31 }
  0x82   : > { %1641 = vmatprep.subr.mxu1 %v1377_v32  ;;  %1604 = vmatpush3.msra.mxu0 %v1329_v34 }
  0x83   : > { %1642 = vmatpush3.msra.mxu1 %v1361_v35  ;;  %1605 = vmatprep.subr.mxu0 %v1344_v36 }
  0x84   : > { %1643 = vmatprep.subr.mxu1 %v1376_v40  ;;  %1606 = vmatpush3.msra.mxu0 %v1328_v43 }
  0x85   : > { %1644 = vmatpush3.msra.mxu1 %v1360_v39  ;;  %1607 = vmatprep.subr.mxu0 %v1343_v55 }
  0x86   : > { %1645 = vmatprep.subr.mxu1 %v1375_v57  ;;  %1608 = vmatpush3.msra.mxu0 %v1327_v46 }
  0x87   : > { %1014 = vmatprep.mubr.f32.mxu0 %v2000_v16  ;;  %1646 = vmatpush3.msra.mxu1 %v1359_v62  ;;  %v933_v16 = vsel %vm912_vm1, %v920_v45, %v932_v50  ;;  %v1401_v50 = vld [vmem:[%s2584_s2] ss:$0 sm:$0xff] }
  0x88   : > { %1089 = vmatprep.mubr.f32.mxu1 %v924_v47  ;;  %1015 = vmatmul.mubr.f32.vlgmr.msra.gmra.mxu0 %v2009_v19  ;;  %v1395_v19 = vld [vmem:[%s2583_s1 + $0x6a0] sm:$0xff] }
  0x89   : > { %1090 = vmatmul.mubr.f32.vlgmr.msra.gmra.mxu1 %v921_v49  ;;  %1701 = vmatprep.subr.mxu0 %v1398_v38 }
  0x8a   : > { %1019 = vmatprep.mubr.f32.mxu0 %v2047_v33  ;;  %1702 = vmatpush3.msra.mxu0 %v1398_v38  ;;  %v1394_v33 = vld [vmem:[%s2583_s1 + $0x698] sm:$0xff] }
  0x8b   : > { %1094 = vmatprep.mubr.f32.mxu1 %v935_v51  ;;  %1703 = vmatprep.subr.mxu0 %v1397_v52 }
  0x8c   : > { %1704 = vmatpush3.msra.mxu0 %v1397_v52 }
  0x8d   : > { %1095 = vmatmul.mubr.f32.gmra.mxu1 %v933_v16  ;;  %1705 = vmatprep.subr.mxu0 %v1396_v48 }
  0x8e   : > { %1020 = vmatmul.mubr.f32.gmra.mxu0 %v2068_v41  ;;  %v1392_v41 = vld [vmem:[%s2583_s1 + $0x688] sm:$0xff] }
  0x8f   : > { %1706 = vmatpush3.msra.mxu0 %v1396_v48  ;;  %1717 = vmatprep.mubr.msk.f32.mxu0 %vm380_vm2, %v2094_v56 }
  0x90   : > { %1707 = vmatprep.subr.mxu0 %v1395_v19 }
  0x91   : > { %1708 = vmatpush3.msra.mxu0 %v1395_v19 }
  0x92   : > { %1709 = vmatprep.subr.mxu0 %v1394_v33 }
  0x93   : > { %1710 = vmatpush3.msra.mxu0 %v1394_v33 }
  0x94   : > { %1711 = vmatprep.subr.mxu0 %v1393_v63 }
  0x95   : > { %1712 = vmatpush3.msra.mxu0 %v1393_v63 }
  0x96   : > { %1713 = vmatprep.subr.mxu0 %v1392_v41 }
  0x97   : > { %1714 = vmatpush3.msra.mxu0 %v1392_v41 }
  0x98   : > { %1715 = vmatprep.subr.mxu0 %v1391_v0 }
  0x99   : > { %1716 = vmatpush3.msra.mxu0 %v1391_v0 }
  0x9a   : > { %1718 = vmatmul.mubr.msk.f32.vlgmr.msra.gmra.mxu0 %vm380_vm2, %v2097_v59 }
  0xee   : > { %v1437_v56 = vpop.f32.mrf.mxu0 }
  0xef   : > { %v1475_v1 = vpop.f32.mrf.mxu1 }
  0xf0   : > { %v1438_v3 = vpop.f32.mrf.mxu0 }
  0xf1   : > { %v1476_v4 = vpop.f32.mrf.mxu1  ;;  %v1439_v24 = vadd.f32 %v1438_v3, %v1437_v56 }
  0xf2   : > { %v1477_v25 = vadd.f32 %v1476_v4, %v1475_v1 }
  0xf4   : > { %v527_v31 = vadd.f32 %v1477_v25, %v1439_v24 }
  0xfb   : > { %v1440_v5 = vpop.f32.mrf.mxu0 }
  0xfc   : > { %v1478_v6 = vpop.f32.mrf.mxu1 }
  0xfd   : > { %v1441_v8 = vpop.f32.mrf.mxu0 }
  0xfe   : > { %v1479_v9 = vpop.f32.mrf.mxu1  ;;  %v1442_v20 = vadd.f32 %v1441_v8, %v1440_v5 }
  0xff   : > { %v1480_v21 = vadd.f32 %v1479_v9, %v1478_v6 }
 0x101   : > { %v532_v27 = vadd.f32 %v1480_v21, %v1442_v20 }
 0x102   : > { %v1681_v10 = vpop.f32.mrf.mxu0 }
 0x103   : > { %v607_v34 = vadd.f32 %v1681_v10, %v532_v27 }
 0x104   : > { %v601_v7 = vpop.f32.mrf.mxu0 }
 0x105   : > { %v602_v42 = vadd.f32 %v601_v7, %v527_v31 }
 0x113   : > { %v1523_v2 = vpop.f32.mrf.mxu1 }
 0x115   : > { %v1524_v11 = vpop.f32.mrf.mxu1 }
 0x116   : > { %v1525_v32 = vadd.f32 %v1524_v11, %v1523_v2 }
 0x118   : > { %v1526_v14 = vpop.f32.mrf.mxu1  ;;  %v681_v39 = vadd.f32 %v1525_v32, %v602_v42 }
 0x11a   : > { %v1527_v58 = vpop.f32.mrf.mxu1 }
 0x11b   : > { %v1528_v30 = vadd.f32 %v1527_v58, %v1526_v14 }
 0x11d   : > { %v686_v37 = vadd.f32 %v1528_v30, %v607_v34 }
 0x125   : > { %v1561_v12 = vpop.f32.mrf.mxu0 }
 0x127   : > { %v1562_v53 = vpop.f32.mrf.mxu0  ;;  %v1700_v15 = vpop.f32.mrf.mxu1 }
 0x128   : > { %v1563_v43 = vadd.f32 %v1562_v53, %v1561_v12 }
 0x129   : > { %v830_v59 = vpop.f32.mrf.mxu1 }
 0x12a   : > { %v756_v46 = vadd.f32 %v1563_v43, %v681_v39 }
 0x12b   : > { %v1564_v13 = vpop.f32.mrf.mxu0 }
 0x12c   : > { %v831_v51 = vadd.f32 %v830_v59, %v756_v46 }
 0x12d   : > { %v1565_v17 = vpop.f32.mrf.mxu0 }
 0x12e   : > { %v1566_v35 = vadd.f32 %v1565_v17, %v1564_v13 }
 0x130   : > { %v761_v44 = vadd.f32 %v1566_v35, %v686_v37 }
 0x132   : > { %v836_v62 = vadd.f32 %v1700_v15, %v761_v44 }
 0x148   : > { %v1609_v18 = vpop.f32.mrf.mxu0 }
 0x149   : > { %v1647_v54 = vpop.f32.mrf.mxu1 }
 0x14a   : > { %v1610_v22 = vpop.f32.mrf.mxu0 }
 0x14b   : > { %v1648_v60 = vpop.f32.mrf.mxu1  ;;  %v1611_v45 = vadd.f32 %v1610_v22, %v1609_v18 }
 0x14c   : > { %v1649_v55 = vadd.f32 %v1648_v60, %v1647_v54 }
 0x14d   : > { %v1650_v23 = vpop.f32.mrf.mxu1 }
 0x14e   : > { %v1612_v26 = vpop.f32.mrf.mxu0  ;;  %v1092_v49 = vadd.f32 %v1649_v55, %v1611_v45 }
 0x14f   : > { %v1651_v29 = vpop.f32.mrf.mxu1 }
 0x150   : > { %v1613_v28 = vpop.f32.mrf.mxu0  ;;  %v1652_v40 = vadd.f32 %v1651_v29, %v1650_v23 }
 0x151   : > { %v1614_v36 = vadd.f32 %v1613_v28, %v1612_v26 }
 0x153   : > { %v1097_v57 = vadd.f32 %v1652_v40, %v1614_v36 }
 0x15a   : > { %v1719_v61 = vpop.f32.mrf.mxu0 }
 0x15b   : > { %v1172_v47 = vadd.f32 %v1719_v61, %v1097_v57 }
 0x15c   : > { %v1166_v38 = vpop.f32.mrf.mxu0 }
 0x15d   : > { %v1176_v52 = vadd.f32 %v1172_v47, %v836_v62  ;;  %v1167_v16 = vadd.f32 %v1166_v38, %v1092_v49 }
 0x15f   : > { %v1185_v48 = vadd.f32 %v1401_v50, %v1176_v52  ;;  %v1175_v19 = vadd.f32 %v1167_v16, %v831_v51 }
 0x161   : > { %1187 = vst [vmem:[%s170_s5 + $0x8] sm:$0xff] %v1185_v48  ;;  %v1184_v33 = vadd.f32 %v1401_v50, %v1175_v19 }
 0x163   : > { %1186 = vst [vmem:[%s170_s5] sm:$0xff] %v1184_v33 }
 0x164 PF: > { %s13_s12 = sadd.s32 1, %s1735_s12  }
 0x165   : > { %p10_p4 = scmp.ge.s32.totalorder %s13_s12, 4  }
 0x167   :  { %12 = sbr.rel (!%p10_p4) target bundleno = 1 (0x1), region = 64 }

</bundles_post_ra>
